<compile_context>
chip_gen: v7x
topology: tpu7x:2x2x1
jax: 0.10.0
libtpu: 0.0.40
codegen_flags: <defaults>
</compile_context>

<pallas_src>
import functools

import jax
import jax.numpy as jnp
from jax.experimental import pallas as pl
from jax.experimental.pallas import tpu as pltpu


def _laplace_loss_kernel(d_ref, lt_ref, out_ref, acc_ref, *, batch_pad):
    # d_ref  : (3*B_pad, tk)  f32   axis-major difference rows, K-slice of vertices
    # lt_ref : (tk, tp)       int8  (K, column) tile of the transposed Laplacian
    # out_ref: (1, 1)         f32   SMEM partial sum for this column tile
    # acc_ref: (3*B_pad, tp)  f32   VMEM accumulator, resident across the K axis
    k = pl.program_id(1)

    @pl.when(k == 0)
    def _():
        acc_ref[...] = jnp.zeros_like(acc_ref)

    # Per-chunk int8 -> f32 upcast (exact: LT entries are small integers), then one MXU matmul.
    acc_ref[...] += jnp.dot(
        d_ref[...],
        lt_ref[...].astype(jnp.float32),
        preferred_element_type=jnp.float32,
    )

    @pl.when(k == pl.num_programs(1) - 1)
    def _():
        lap = acc_ref[...]                      # (3*B_pad, tp): predict_laplace - gt_laplace
        sq = lap * lap
        # Rows are axis-major and batch_pad is a multiple of 8, so these slices are
        # sublane-aligned: the xyz reduce is two lane-dense VPU adds.
        nsq = (sq[0:batch_pad, :]
               + sq[batch_pad:2 * batch_pad, :]
               + sq[2 * batch_pad:3 * batch_pad, :])   # (B_pad, tp)
        out_ref[0, 0] = jnp.sum(jnp.sqrt(nsq))


def precompute_laplacian_t(neighbour, degrees, point_num, *, pad_to=512):
    """Static per-mesh glue; run ONCE (eagerly) and cache — mirrors the fixed nn.Parameters.

    Returns LT = (diag(degrees) - A)^T, zero-padded to (P_pad, P_pad) with
    P_pad = ceil(P / pad_to) * pad_to, stored as int8.  A[i, j] is the multiplicity of vertex j
    among neighbour[i]; the padding index == point_num maps to the zero pad row and is dropped.
    All entries are small signed integers — exact in int8 (asserted).
    """
    P = int(point_num)
    M = neighbour.shape[1]
    rows = jnp.repeat(jnp.arange(P, dtype=jnp.int32), M)
    cols = neighbour.reshape(-1).astype(jnp.int32)
    adj = jnp.zeros((P, P + 1), jnp.int32).at[rows, cols].add(1)[:, :P]   # A[i, j]
    lap = jnp.diag(degrees.astype(jnp.int32)) - adj                       # L = D - A

    max_abs = int(jnp.max(jnp.abs(lap)))
    assert max_abs <= 127, f"Laplacian entries ({max_abs}) exceed int8 range"

    p_pad = ((P + pad_to - 1) // pad_to) * pad_to
    lap_t = jnp.pad(lap.T, ((0, p_pad - P), (0, p_pad - P)))              # zero pad: inert
    return lap_t.astype(jnp.int8)


def _pick_tile(p_pad, want):
    t = min(want, p_pad)
    while p_pad % t != 0:
        t -= 128
    return t


def laplace_mean_euclidean_loss(predict_points, gt_points, laplacian_t, *,
                                col_tile=512, k_tile=512):
    B, P, _ = predict_points.shape
    P_pad = laplacian_t.shape[0]
    assert laplacian_t.shape == (P_pad, P_pad)
    assert laplacian_t.dtype == jnp.int8, "laplacian_t must come from precompute_laplacian_t"
    assert P_pad >= P and P_pad % 128 == 0
    assert col_tile % 128 == 0 and k_tile % 128 == 0

    # Pad batch to a sublane-aligned group size; padded rows contribute sqrt(0) = 0.
    B_pad = ((B + 7) // 8) * 8

    # Lane-dense, axis-major difference with batch fused: (3*B_pad, P_pad), row r = axis*B_pad + b.
    diff = (predict_points - gt_points).astype(jnp.float32)          # (B, P, 3)
    d = jnp.transpose(diff, (2, 0, 1))                                # (3, B, P)
    d = jnp.pad(d, ((0, 0), (0, B_pad - B), (0, P_pad - P)))
    d = d.reshape(3 * B_pad, P_pad)

    tp = _pick_tile(P_pad, col_tile)   # output-vertex column tile
    tk = _pick_tile(P_pad, k_tile)     # contraction tile
    gj = P_pad // tp
    gk = P_pad // tk

    # Per-step VMEM: double-buffered d K-slice + double-buffered int8 LT tile + f32 accumulator
    # + per-chunk f32 upcast temp, plus headroom.  Clamped well below v7x's 64 MiB physical VMEM.
    vmem_need = (2 * (3 * B_pad) * tk * 4
                 + 2 * tk * tp
                 + (3 * B_pad) * tp * 4
                 + tk * tp * 4
                 + (4 << 20))
    vmem_limit = int(min(max(vmem_need, 16 << 20), 48 << 20))

    partials = pl.pallas_call(
        functools.partial(_laplace_loss_kernel, batch_pad=B_pad),
        out_shape=jax.ShapeDtypeStruct((gj, 1), jnp.float32),
        grid_spec=pltpu.PrefetchScalarGridSpec(
            num_scalar_prefetch=0,
            grid=(gj, gk),
            in_specs=[
                pl.BlockSpec((3 * B_pad, tk), lambda j, k: (0, k)),   # d K-slice (tiny)
                pl.BlockSpec((tk, tp), lambda j, k: (k, j)),          # LT tile (int8, the hot stream)
            ],
            out_specs=pl.BlockSpec((1, 1), lambda j, k: (j, 0),
                                   memory_space=pltpu.SMEM),
            scratch_shapes=[pltpu.VMEM((3 * B_pad, tp), jnp.float32)],
        ),
        compiler_params=pltpu.CompilerParams(
            dimension_semantics=("parallel", "arbitrary"),
            vmem_limit_bytes=vmem_limit,
        ),
    )(d, laplacian_t)

    # mean over batch of (sum over vertices)  ==  total / B   (original batch, not padded)
    return jnp.sum(partials) / jnp.float32(B)


def _reference(pred, gt, neighbour, degrees):
    # Direct transcription of the PyTorch forward (gather form), for verification.
    B = pred.shape[0]
    zeros = jnp.zeros((B, 1, 3), pred.dtype)
    pp = jnp.concatenate([pred, zeros], axis=1)
    pg = jnp.concatenate([gt, zeros], axis=1)
    deg = degrees.astype(pred.dtype)[None, :, None]
    gt_lap = gt * deg - pg[:, neighbour, :].sum(axis=2)
    pr_lap = pred * deg - pp[:, neighbour, :].sum(axis=2)
    return jnp.sqrt(((pr_lap - gt_lap) ** 2).sum(2)).sum(1).mean()


if __name__ == "__main__":
    B, P, M = 2, 64, 8   # batch, point_num, max_degree
    key = jax.random.PRNGKey(0)
    k1, k2, k3, k4 = jax.random.split(key, 4)

    pred = jax.random.normal(k1, (B, P, 3), jnp.float32)
    gt = jax.random.normal(k2, (B, P, 3), jnp.float32)

    # Deterministic synthetic "mesh": each vertex has degree in [1, M]; unused neighbour slots
    # point at the padding index P (the zero row in the padded point tensor).
    degrees = jax.random.randint(k3, (P,), 1, M + 1, dtype=jnp.int32)
    nbr_full = jax.random.randint(k4, (P, M), 0, P, dtype=jnp.int32)
    valid = jnp.arange(M, dtype=jnp.int32)[None, :] < degrees[:, None]
    neighbour = jnp.where(valid, nbr_full, P)

    # Static per-mesh precompute (done once, outside the per-call path).
    laplacian_t = precompute_laplacian_t(neighbour, degrees, P)

    loss = laplace_mean_euclidean_loss(pred, gt, laplacian_t)
    loss = jax.block_until_ready(loss)

    ref = _reference(pred, gt, neighbour, degrees)
    assert jnp.allclose(loss, ref, rtol=1e-4, atol=1e-4), (loss, ref)
    print("KERNEL_OK")
</pallas_src>

<mosaic_0001>
module attributes {stable_mosaic.version = 11 : i64} {
  func.func @_laplace_loss_kernel(%arg0: i32, %arg1: i32, %arg2: memref<24x512xf32, #tpu.memory_space<vmem>>, %arg3: memref<512x512xi8, #tpu.memory_space<vmem>>, %arg4: memref<1x1xf32, #tpu.memory_space<smem>>, %arg5: memref<24x512xf32, #tpu.memory_space<vmem>>) attributes {dimension_semantics = [#tpu.dimension_semantics<parallel>, #tpu.dimension_semantics<arbitrary>], iteration_bounds = array<i64: 1, 1>, scalar_prefetch = 0 : i64, scratch_operands = 1 : i64, tpu.core_type = #tpu.core_type<tc>, window_params = [{transform_indices = @transform_0, window_bounds = array<i64: 24, 512>}, {transform_indices = @transform_1, window_bounds = array<i64: 512, 512>}, {transform_indices = @transform_2, window_bounds = array<i64: 1, 1>}]} {
    %c0_i32 = arith.constant 0 : i32
    %0 = arith.cmpi eq, %arg1, %c0_i32 : i32
    %1 = arith.extui %0 : i1 to i32
    %c0_i32_0 = arith.constant 0 : i32
    %2 = arith.cmpi ne, %1, %c0_i32_0 : i32
    scf.if %2 {
      %cst_10 = arith.constant 0.000000e+00 : f32
      %13 = vector.broadcast %cst_10 : f32 to vector<24x512xf32>
      %c0_11 = arith.constant 0 : index
      %c0_12 = arith.constant 0 : index
      %14 = vector.load %arg5[%c0_11, %c0_12] : memref<24x512xf32, #tpu.memory_space<vmem>>, vector<24x512xf32>
      tpu.vector_store %arg5[%c0_11, %c0_12], %13 {strides = array<i32>} : memref<24x512xf32, #tpu.memory_space<vmem>>, vector<24x512xf32>,
    } else {
    }
    %c0 = arith.constant 0 : index
    %c0_1 = arith.constant 0 : index
    %3 = vector.load %arg5[%c0, %c0_1] : memref<24x512xf32, #tpu.memory_space<vmem>>, vector<24x512xf32>
    %c0_2 = arith.constant 0 : index
    %c0_3 = arith.constant 0 : index
    %4 = vector.load %arg2[%c0_2, %c0_3] : memref<24x512xf32, #tpu.memory_space<vmem>>, vector<24x512xf32>
    %c0_4 = arith.constant 0 : index
    %c0_5 = arith.constant 0 : index
    %5 = vector.load %arg3[%c0_4, %c0_5] : memref<512x512xi8, #tpu.memory_space<vmem>>, vector<512x512xi8>
    %6 = arith.sitofp %5 : vector<512x512xi8> to vector<512x512xf32>
    %cst = arith.constant dense<0.000000e+00> : vector<24x512xf32>
    %7 = tpu.matmul %4, %6, %cst {dimension_numbers = #tpu.dot_dimension_numbers<[1], [0], [0], [1], [0, 0, 1, 1], [], []>} : vector<24x512xf32>, vector<512x512xf32>, vector<24x512xf32> -> vector<24x512xf32>
    %8 = arith.addf %3, %7 : vector<24x512xf32>
    %c0_6 = arith.constant 0 : index
    %c0_7 = arith.constant 0 : index
    %9 = vector.load %arg5[%c0_6, %c0_7] : memref<24x512xf32, #tpu.memory_space<vmem>>, vector<24x512xf32>
    tpu.vector_store %arg5[%c0_6, %c0_7], %8 {strides = array<i32>} : memref<24x512xf32, #tpu.memory_space<vmem>>, vector<24x512xf32>,
    %c0_i32_8 = arith.constant 0 : i32
    %10 = arith.cmpi eq, %arg1, %c0_i32_8 : i32
    %11 = arith.extui %10 : i1 to i32
    %c0_i32_9 = arith.constant 0 : i32
    %12 = arith.cmpi ne, %11, %c0_i32_9 : i32
    scf.if %12 {
      %c0_10 = arith.constant 0 : index
      %c0_11 = arith.constant 0 : index
      %13 = vector.load %arg5[%c0_10, %c0_11] : memref<24x512xf32, #tpu.memory_space<vmem>>, vector<24x512xf32>
      %14 = arith.mulf %13, %13 : vector<24x512xf32>
      %15 = vector.extract_strided_slice %14 {offsets = [0, 0], sizes = [8, 512], strides = [1, 1]} : vector<24x512xf32> to vector<8x512xf32>
      %16 = vector.extract_strided_slice %14 {offsets = [8, 0], sizes = [8, 512], strides = [1, 1]} : vector<24x512xf32> to vector<8x512xf32>
      %17 = arith.addf %15, %16 : vector<8x512xf32>
      %18 = vector.extract_strided_slice %14 {offsets = [16, 0], sizes = [8, 512], strides = [1, 1]} : vector<24x512xf32> to vector<8x512xf32>
      %19 = arith.addf %17, %18 : vector<8x512xf32>
      %20 = math.sqrt %19 : vector<8x512xf32>
      %21 = vector.shape_cast %20 : vector<8x512xf32> to vector<1x8x512xf32>
      %cst_12 = arith.constant dense<0.000000e+00> : vector<1xf32>
      %22 = vector.multi_reduction <add>, %21, %cst_12 [1, 2] : vector<1x8x512xf32> to vector<1xf32>
      %23 = vector.shape_cast %22 : vector<1xf32> to vector<1x1x1xf32>
      %24 = vector.extract %23[0, 0, 0] : f32 from vector<1x1x1xf32>
      %c0_13 = arith.constant 0 : index
      %c0_14 = arith.constant 0 : index
      %25 = memref.load %arg4[%c0_13, %c0_14] : memref<1x1xf32, #tpu.memory_space<smem>>
      memref.store %24, %arg4[%c0_13, %c0_14] : memref<1x1xf32, #tpu.memory_space<smem>>
    } else {
    }
    return
  }
  func.func @transform_0(%arg0: i32, %arg1: i32) -> (i32, i32) {
    %c0_i32 = arith.constant 0 : i32
    %c0_i32_0 = arith.constant 0 : i32
    return %c0_i32, %arg1 : i32, i32
  }
  func.func @transform_1(%arg0: i32, %arg1: i32) -> (i32, i32) {
    %c0_i32 = arith.constant 0 : i32
    return %arg1, %arg0 : i32, i32
  }
  func.func @transform_2(%arg0: i32, %arg1: i32) -> (i32, i32) {
    %c0_i32 = arith.constant 0 : i32
    %c0_i32_0 = arith.constant 0 : i32
    return %arg0, %c0_i32 : i32, i32
  }
}

</mosaic_0001>

<bundles_post_ra>
// kernel: tpu_custom_call.1
= control target key start
LH: loop header
LB: loop body
LE: loop exit
PB: predicated region body
PF: predicated region fallthrough
CT: control target
= control target key end

     0   :  { %7 = vsyncpa [#allocation4], 0  ;;  %s1503_s0 = inlined_call_operand.hbm [shape: f32[24,512], index: 0, kind: input, shape index: {}]   ;;  %s1504_s1 = inlined_call_operand.hbm [shape: s8[512,512], index: 1, kind: input, shape index: {}]   ;;  %s1505_s2 = inlined_call_operand.hbm [shape: f32[1,1], index: 2, kind: output, shape index: {}]  }
   0x1   :  { %8 = vsyncpa [#allocation7], 0 }
   0x2   :  { %9 = vsyncpa [#allocation5], 0  ;;  %s1447_s9 = smov [#allocation3]   ;;  %s1387_s13 = scalar_lea.hbm %s1503_s0, 1536 }
   0x3   :  { %s15_s10 = sshll.u32 %s1447_s9, 4  ;;  %p1388_p0 = scmp.ne.s32.totalorder %s1503_s0, %s1387_s13  ;;  %s16_s10 = int_to_ptr.vmem [resolvable:$true] %s15_s10 }
   0x4   :  { %p1391_p1 = scmp.lt.u32.totalorder %s1387_s13, %s1503_s0 }
   0x6   :  { %p1393_p2 = pnand %p1391_p1, %p1388_p0 }
   0x8   :  { %1396 = shalt.err (!%p1393_p2)
}
   0x9   :  { %s1397_s18 = scalar_lea.vmem %s16_s10, 1536  ;;  %p1402_p4 = scmp.lt.s32.totalorder %s16_s10, %s16_s10 }
   0xa   :  { %p1398_p3 = scmp.ne.s32.totalorder %s16_s10, %s1397_s18  ;;  %p1403_p5 = scmp.lt.s32.totalorder %s1397_s18, %s1397_s18 }
   0xc   :  { %p1404_p6 = por %p1403_p5, %p1402_p4 }
   0xe   :  { %p1405_p7 = pnand %p1404_p6, %p1398_p3 }
  0x10   :  { %1408 = shalt.err (!%p1405_p7)
}
  0x11   :  { %s1448_s19 = smov 512   ;;  %s1449_s20 = smov 32  }
  0x12   :  { %21 = dma.hbm_to_vmem [thread:$0]  %s1503_s0, 1536, %s16_s10, [#allocation4], %s1448_s19, %s1448_s19, %s1449_s20  }
  0x13   :  { %s1450_s23 = smov [#allocation6]   ;;  %s1409_s27 = scalar_lea.hbm %s1504_s1, 8192 }
  0x14   :  { %s27_s24 = sshll.u32 %s1450_s23, 4  ;;  %p1410_p8 = scmp.ne.s32.totalorder %s1504_s1, %s1409_s27  ;;  %s28_s24 = int_to_ptr.vmem [resolvable:$true] %s27_s24 }
  0x15   :  { %p1413_p9 = scmp.lt.u32.totalorder %s1409_s27, %s1504_s1 }
  0x17   :  { %p1415_p10 = pnand %p1413_p9, %p1410_p8 }
  0x19   :  { %1418 = shalt.err (!%p1415_p10)
}
  0x1a   :  { %s1419_s4 = scalar_lea.vmem %s28_s24, 8192  ;;  %p1424_p12 = scmp.lt.s32.totalorder %s28_s24, %s28_s24 }
  0x1b   :  { %p1420_p11 = scmp.ne.s32.totalorder %s28_s24, %s1419_s4  ;;  %p1425_p13 = scmp.lt.s32.totalorder %s1419_s4, %s1419_s4 }
  0x1d   :  { %p1426_p0 = por %p1425_p13, %p1424_p12 }
  0x1f   :  { %p1427_p1 = pnand %p1426_p0, %p1420_p11 }
  0x21   :  { %1430 = shalt.err (!%p1427_p1)
}
  0x22   :  { %33 = dma.hbm_to_vmem [thread:$0]  %s1504_s1, 8192, %s28_s24, [#allocation7], %s1448_s19, %s1448_s19, %s1449_s20  }
  0x23   :  { %1441 = dma.done.wait [#allocation4], 1536  }
  0x24   :  { %1442 = vsyncadd [#allocation4], 4294965760 }
  0x25   :  { %1443 = dma.done.wait [#allocation7], 8192  }
  0x26   :  { %1444 = vsyncadd [#allocation7], 4294959104  ;;  %v81_v0 = vld [vmem:[#allocation6 + $0x8] sm:$0xff]  ;;  %v83_v1 = vld [vmem:[#allocation6 + $0x18] sm:$0xff]  ;;  %s1431_s8 = scalar_lea.hbm %s1505_s2, 16 }
  0x27   :  { %v80_v2 = vld [vmem:[#allocation6] sm:$0xff]  ;;  %v1104_v3 = vunpack.c.l.s8.bf16 %v81_v0  ;;  %v1108_v4 = vunpack.c.h.s8.bf16 %v81_v0  ;;  %v1232_v5 = vunpack.c.l.s8.bf16 %v83_v1  ;;  %v1236_v6 = vunpack.c.h.s8.bf16 %v83_v1  ;;  %v82_v7 = vld [vmem:[#allocation6 + $0x10] sm:$0xff]  ;;  %v85_v10 = vld [vmem:[#allocation6 + $0x28] sm:$0xff]  ;;  %p1432_p2 = scmp.ne.s32.totalorder %s1505_s2, %s1431_s8  ;;  %p1435_p3 = scmp.lt.u32.totalorder %s1431_s8, %s1505_s2 }
  0x28   :  { %v1106_v8 = vunpack.c.l.s8.bf16 %v80_v2  ;;  %v1234_v9 = vunpack.c.l.s8.bf16 %v82_v7  ;;  %v87_v11 = vld [vmem:[#allocation6 + $0x38] sm:$0xff]  ;;  %v1110_v12 = vunpack.c.h.s8.bf16 %v80_v2  ;;  %v1238_v13 = vunpack.c.h.s8.bf16 %v82_v7  ;;  %v84_v16 = vld [vmem:[#allocation6 + $0x20] sm:$0xff]  ;;  %v86_v17 = vld [vmem:[#allocation6 + $0x30] sm:$0xff] }
  0x29   :  { %1105 = vmatprep.subr.bf16.mxu0 %v1104_v3  ;;  %1233 = vmatprep.subr.bf16.mxu1 %v1232_v5  ;;  %v1112_v14 = vunpack.c.l.s8.bf16 %v85_v10  ;;  %v1240_v15 = vunpack.c.l.s8.bf16 %v87_v11  ;;  %v1114_v18 = vunpack.c.l.s8.bf16 %v84_v16  ;;  %v1242_v19 = vunpack.c.l.s8.bf16 %v86_v17  ;;  %v89_v22 = vld [vmem:[#allocation6 + $0x48] sm:$0xff]  ;;  %v91_v23 = vld [vmem:[#allocation6 + $0x58] sm:$0xff]  ;;  %v88_v29 = vld [vmem:[#allocation6 + $0x40] sm:$0xff]  ;;  %p1437_p4 = pnand %p1435_p3, %p1432_p2 }
  0x2a   :  { %1107 = vmatpush1.bf16.msra.mxu0 %v1106_v8  ;;  %1235 = vmatpush1.bf16.msra.mxu1 %v1234_v9  ;;  %v1116_v20 = vunpack.c.h.s8.bf16 %v85_v10  ;;  %v1244_v21 = vunpack.c.h.s8.bf16 %v87_v11  ;;  %v69_v24 = vld [vmem:[#allocation3 + $0x8] sm:$0xff]  ;;  %v1118_v25 = vunpack.c.h.s8.bf16 %v84_v16  ;;  %v1246_v26 = vunpack.c.h.s8.bf16 %v86_v17  ;;  %v90_v30 = vld [vmem:[#allocation6 + $0x50] sm:$0xff]  ;;  %v95_v36 = vld [vmem:[#allocation6 + $0x78] sm:$0xff] }
  0x2b   :  { %1109 = vmatprep.subr.bf16.mxu0 %v1108_v4  ;;  %1237 = vmatprep.subr.bf16.mxu1 %v1236_v6  ;;  %v1120_v27 = vunpack.c.l.s8.bf16 %v89_v22  ;;  %v1248_v28 = vunpack.c.l.s8.bf16 %v91_v23  ;;  %v1122_v31 = vunpack.c.l.s8.bf16 %v88_v29  ;;  %v1250_v32 = vunpack.c.l.s8.bf16 %v90_v30  ;;  %v93_v35 = vld [vmem:[#allocation6 + $0x68] sm:$0xff]  ;;  %v92_v41 = vld [vmem:[#allocation6 + $0x60] sm:$0xff]  ;;  %v94_v42 = vld [vmem:[#allocation6 + $0x70] sm:$0xff] }
  0x2c   :  { %720 = vmatprep.mubr.f32.mxu0 %v69_v24  ;;  %886 = vmatprep.mubr.f32.mxu1 %v69_v24  ;;  %v1124_v33 = vunpack.c.h.s8.bf16 %v89_v22  ;;  %v1252_v34 = vunpack.c.h.s8.bf16 %v91_v23  ;;  %v1126_v37 = vunpack.c.h.s8.bf16 %v88_v29  ;;  %v1254_v38 = vunpack.c.h.s8.bf16 %v90_v30  ;;  %v97_v47 = vld [vmem:[#allocation6 + $0x88] sm:$0xff]  ;;  %v99_v48 = vld [vmem:[#allocation6 + $0x98] sm:$0xff]  ;;  %v96_v53 = vld [vmem:[#allocation6 + $0x80] sm:$0xff] }
  0x2d   :  { %v1128_v39 = vunpack.c.l.s8.bf16 %v93_v35  ;;  %v1256_v40 = vunpack.c.l.s8.bf16 %v95_v36  ;;  %v1130_v43 = vunpack.c.l.s8.bf16 %v92_v41  ;;  %v1258_v44 = vunpack.c.l.s8.bf16 %v94_v42  ;;  %v98_v54 = vld [vmem:[#allocation6 + $0x90] sm:$0xff]  ;;  %v101_v59 = vld [vmem:[#allocation6 + $0xa8] sm:$0xff]  ;;  %v103_v60 = vld [vmem:[#allocation6 + $0xb8] sm:$0xff] }
  0x2e   :  { %1111 = vmatpush1.bf16.msra.mxu0 %v1110_v12  ;;  %1239 = vmatpush1.bf16.msra.mxu1 %v1238_v13  ;;  %v1132_v45 = vunpack.c.h.s8.bf16 %v93_v35  ;;  %v1260_v46 = vunpack.c.h.s8.bf16 %v95_v36  ;;  %v1134_v49 = vunpack.c.h.s8.bf16 %v92_v41  ;;  %v1262_v50 = vunpack.c.h.s8.bf16 %v94_v42  ;;  %v100_v1 = vld [vmem:[#allocation6 + $0xa0] sm:$0xff]  ;;  %v102_v2 = vld [vmem:[#allocation6 + $0xb0] sm:$0xff]  ;;  %v105_v7 = vld [vmem:[#allocation6 + $0xc8] sm:$0xff] }
  0x2f   :  { %1113 = vmatprep.subr.bf16.mxu0 %v1112_v14  ;;  %1241 = vmatprep.subr.bf16.mxu1 %v1240_v15  ;;  %v1136_v51 = vunpack.c.l.s8.bf16 %v97_v47  ;;  %v1264_v52 = vunpack.c.l.s8.bf16 %v99_v48  ;;  %v1138_v55 = vunpack.c.l.s8.bf16 %v96_v53  ;;  %v1266_v56 = vunpack.c.l.s8.bf16 %v98_v54  ;;  %v107_v8 = vld [vmem:[#allocation6 + $0xd8] sm:$0xff]  ;;  %v104_v13 = vld [vmem:[#allocation6 + $0xc0] sm:$0xff]  ;;  %v106_v14 = vld [vmem:[#allocation6 + $0xd0] sm:$0xff] }
  0x30   :  { %v1140_v57 = vunpack.c.h.s8.bf16 %v97_v47  ;;  %v1268_v58 = vunpack.c.h.s8.bf16 %v99_v48  ;;  %v1142_v61 = vunpack.c.h.s8.bf16 %v96_v53  ;;  %v1270_v62 = vunpack.c.h.s8.bf16 %v98_v54  ;;  %v118_v53 = vld [vmem:[#allocation6 + $0x130] sm:$0xff]  ;;  %v77_v54 = vld [vmem:[#allocation3 + $0x48] sm:$0xff] }
  0x31   :  { %v1144_v63 = vunpack.c.l.s8.bf16 %v101_v59  ;;  %v1272_v0 = vunpack.c.l.s8.bf16 %v103_v60  ;;  %v1146_v3 = vunpack.c.l.s8.bf16 %v100_v1  ;;  %v1274_v4 = vunpack.c.l.s8.bf16 %v102_v2 }
  0x32   :  { %1115 = vmatpush1.bf16.msra.mxu0 %v1114_v18  ;;  %1243 = vmatpush1.bf16.msra.mxu1 %v1242_v19  ;;  %v1148_v5 = vunpack.c.h.s8.bf16 %v101_v59  ;;  %v1276_v6 = vunpack.c.h.s8.bf16 %v103_v60  ;;  %v1150_v9 = vunpack.c.h.s8.bf16 %v100_v1  ;;  %v1278_v10 = vunpack.c.h.s8.bf16 %v102_v2  ;;  %v109_v19 = vld [vmem:[#allocation6 + $0xe8] sm:$0xff] }
  0x33   :  { %1117 = vmatprep.subr.bf16.mxu0 %v1116_v20  ;;  %1245 = vmatprep.subr.bf16.mxu1 %v1244_v21  ;;  %v1152_v11 = vunpack.c.l.s8.bf16 %v105_v7  ;;  %v1280_v12 = vunpack.c.l.s8.bf16 %v107_v8  ;;  %v1154_v15 = vunpack.c.l.s8.bf16 %v104_v13  ;;  %v1282_v16 = vunpack.c.l.s8.bf16 %v106_v14  ;;  %v111_v20 = vld [vmem:[#allocation6 + $0xf8] sm:$0xff]  ;;  %v121_v60 = vld [vmem:[#allocation6 + $0x148] sm:$0xff] }
  0x34   :  { %v1156_v17 = vunpack.c.h.s8.bf16 %v105_v7  ;;  %v1284_v18 = vunpack.c.h.s8.bf16 %v107_v8  ;;  %v1158_v21 = vunpack.c.h.s8.bf16 %v104_v13  ;;  %v1286_v22 = vunpack.c.h.s8.bf16 %v106_v14 }
  0x35   :  { %v1160_v23 = vunpack.c.l.s8.bf16 %v109_v19  ;;  %v1288_v24 = vunpack.c.l.s8.bf16 %v111_v20  ;;  %v1164_v29 = vunpack.c.h.s8.bf16 %v109_v19  ;;  %v1292_v30 = vunpack.c.h.s8.bf16 %v111_v20 }
  0x36   :  { %1119 = vmatpush1.bf16.msra.mxu0 %v1118_v25  ;;  %1247 = vmatpush1.bf16.msra.mxu1 %v1246_v26  ;;  %v108_v25 = vld [vmem:[#allocation6 + $0xe0] sm:$0xff]  ;;  %v110_v26 = vld [vmem:[#allocation6 + $0xf0] sm:$0xff]  ;;  %v1184_v1 = vunpack.c.l.s8.bf16 %v121_v60  ;;  %v1188_v7 = vunpack.c.h.s8.bf16 %v121_v60 }
  0x37   :  { %1121 = vmatprep.subr.bf16.mxu0 %v1120_v27  ;;  %1249 = vmatprep.subr.bf16.mxu1 %v1248_v28  ;;  %v1162_v27 = vunpack.c.l.s8.bf16 %v108_v25  ;;  %v1290_v28 = vunpack.c.l.s8.bf16 %v110_v26 }
  0x3a   :  { %1123 = vmatpush1.bf16.msra.mxu0 %v1122_v31  ;;  %1251 = vmatpush1.bf16.msra.mxu1 %v1250_v32  ;;  %v113_v31 = vld [vmem:[#allocation6 + $0x108] sm:$0xff]  ;;  %v115_v32 = vld [vmem:[#allocation6 + $0x118] sm:$0xff] }
  0x3b   :  { %1125 = vmatprep.subr.bf16.mxu0 %v1124_v33  ;;  %1253 = vmatprep.subr.bf16.mxu1 %v1252_v34  ;;  %v1166_v33 = vunpack.c.h.s8.bf16 %v108_v25  ;;  %v1294_v34 = vunpack.c.h.s8.bf16 %v110_v26  ;;  %v1168_v35 = vunpack.c.l.s8.bf16 %v113_v31  ;;  %v1296_v36 = vunpack.c.l.s8.bf16 %v115_v32 }
  0x3c   :  { %v1172_v42 = vunpack.c.h.s8.bf16 %v113_v31 }
  0x3e   :  { %1127 = vmatpush1.bf16.msra.mxu0 %v1126_v37  ;;  %1255 = vmatpush1.bf16.msra.mxu1 %v1254_v38  ;;  %v112_v37 = vld [vmem:[#allocation6 + $0x100] sm:$0xff]  ;;  %v114_v38 = vld [vmem:[#allocation6 + $0x110] sm:$0xff] }
  0x3f   :  { %1129 = vmatprep.subr.bf16.mxu0 %v1128_v39  ;;  %1257 = vmatprep.subr.bf16.mxu1 %v1256_v40  ;;  %v68_v39 = vld [vmem:[#allocation3] sm:$0xff]  ;;  %v1170_v40 = vunpack.c.l.s8.bf16 %v112_v37  ;;  %v1298_v41 = vunpack.c.l.s8.bf16 %v114_v38  ;;  %v1174_v47 = vunpack.c.h.s8.bf16 %v112_v37  ;;  %v1302_v48 = vunpack.c.h.s8.bf16 %v114_v38 }
  0x42   :  { %1131 = vmatpush1.bf16.msra.mxu0 %v1130_v43  ;;  %1259 = vmatpush1.bf16.msra.mxu1 %v1258_v44  ;;  %v1300_v43 = vunpack.c.h.s8.bf16 %v115_v32  ;;  %v117_v44 = vld [vmem:[#allocation6 + $0x128] sm:$0xff] }
  0x43   :  { %1133 = vmatprep.subr.bf16.mxu0 %v1132_v45  ;;  %1261 = vmatprep.subr.bf16.mxu1 %v1260_v46  ;;  %v119_v45 = vld [vmem:[#allocation6 + $0x138] sm:$0xff]  ;;  %v73_v46 = vld [vmem:[#allocation3 + $0x28] sm:$0xff] }
  0x44   :  { %v1308_v59 = vunpack.c.h.s8.bf16 %v119_v45 }
  0x46   :  { %1135 = vmatpush1.bf16.msra.mxu0 %v1134_v49  ;;  %1263 = vmatpush1.bf16.msra.mxu1 %v1262_v50  ;;  %v72_v49 = vld [vmem:[#allocation3 + $0x20] sm:$0xff]  ;;  %v1176_v50 = vunpack.c.l.s8.bf16 %v117_v44 }
  0x47   :  { %1137 = vmatprep.subr.bf16.mxu0 %v1136_v51  ;;  %1265 = vmatprep.subr.bf16.mxu1 %v1264_v52  ;;  %v1304_v51 = vunpack.c.l.s8.bf16 %v119_v45  ;;  %v116_v52 = vld [vmem:[#allocation6 + $0x120] sm:$0xff]  ;;  %v137_v45 = vld [vmem:[#allocation6 + $0x1c8] sm:$0xff] }
  0x4a   :  { %1139 = vmatpush1.bf16.msra.mxu0 %v1138_v55  ;;  %1267 = vmatpush1.bf16.msra.mxu1 %v1266_v56  ;;  %v1178_v55 = vunpack.c.l.s8.bf16 %v116_v52  ;;  %v1306_v56 = vunpack.c.l.s8.bf16 %v118_v53 }
  0x4b   :  { %1141 = vmatprep.subr.bf16.mxu0 %v1140_v57  ;;  %1269 = vmatprep.subr.bf16.mxu1 %v1268_v58  ;;  %v76_v57 = vld [vmem:[#allocation3 + $0x40] sm:$0xff]  ;;  %v1180_v58 = vunpack.c.h.s8.bf16 %v117_v44 }
  0x4e   :  { %1143 = vmatpush1.bf16.msra.mxu0 %v1142_v61  ;;  %1271 = vmatpush1.bf16.msra.mxu1 %v1270_v62  ;;  %v123_v61 = vld [vmem:[#allocation6 + $0x158] sm:$0xff] }
  0x4f   :  { %1145 = vmatprep.subr.bf16.mxu0 %v1144_v63  ;;  %1273 = vmatprep.subr.bf16.mxu1 %v1272_v0  ;;  %v71_v62 = vld [vmem:[#allocation3 + $0x18] sm:$0xff]  ;;  %v1182_v63 = vunpack.c.h.s8.bf16 %v116_v52  ;;  %v1310_v0 = vunpack.c.h.s8.bf16 %v118_v53  ;;  %v1312_v2 = vunpack.c.l.s8.bf16 %v123_v61  ;;  %v1316_v8 = vunpack.c.h.s8.bf16 %v123_v61  ;;  %v138_v52 = vld [vmem:[#allocation6 + $0x1d0] sm:$0xff] }
  0x50   :  { %v1350_v60 = vunpack.c.h.s8.bf16 %v138_v52 }
  0x52   :  { %1147 = vmatpush1.bf16.msra.mxu0 %v1146_v3  ;;  %1275 = vmatpush1.bf16.msra.mxu1 %v1274_v4  ;;  %v120_v3 = vld [vmem:[#allocation6 + $0x140] sm:$0xff]  ;;  %v122_v4 = vld [vmem:[#allocation6 + $0x150] sm:$0xff] }
  0x53   :  { %1149 = vmatprep.subr.bf16.mxu0 %v1148_v5  ;;  %1277 = vmatprep.subr.bf16.mxu1 %v1276_v6  ;;  %v1186_v5 = vunpack.c.l.s8.bf16 %v120_v3  ;;  %v1314_v6 = vunpack.c.l.s8.bf16 %v122_v4 }
  0x56   :  { %1151 = vmatpush1.bf16.msra.mxu0 %v1150_v9  ;;  %1279 = vmatpush1.bf16.msra.mxu1 %v1278_v10  ;;  %v125_v9 = vld [vmem:[#allocation6 + $0x168] sm:$0xff]  ;;  %v127_v10 = vld [vmem:[#allocation6 + $0x178] sm:$0xff] }
  0x57   :  { %1153 = vmatprep.subr.bf16.mxu0 %v1152_v11  ;;  %1281 = vmatprep.subr.bf16.mxu1 %v1280_v12  ;;  %v1190_v11 = vunpack.c.h.s8.bf16 %v120_v3  ;;  %v1318_v12 = vunpack.c.h.s8.bf16 %v122_v4  ;;  %v1192_v13 = vunpack.c.l.s8.bf16 %v125_v9  ;;  %v1320_v14 = vunpack.c.l.s8.bf16 %v127_v10 }
  0x58   :  { %v1196_v19 = vunpack.c.h.s8.bf16 %v125_v9  ;;  %v1324_v20 = vunpack.c.h.s8.bf16 %v127_v10  ;;  %v74_v9 = vld [vmem:[#allocation3 + $0x30] sm:$0xff]  ;;  %v79_v10 = vld [vmem:[#allocation3 + $0x58] sm:$0xff] }
  0x5a   :  { %1155 = vmatpush1.bf16.msra.mxu0 %v1154_v15  ;;  %1283 = vmatpush1.bf16.msra.mxu1 %v1282_v16  ;;  %v124_v15 = vld [vmem:[#allocation6 + $0x160] sm:$0xff]  ;;  %v126_v16 = vld [vmem:[#allocation6 + $0x170] sm:$0xff] }
  0x5b   :  { %1157 = vmatprep.subr.bf16.mxu0 %v1156_v17  ;;  %1285 = vmatprep.subr.bf16.mxu1 %v1284_v18  ;;  %v1194_v17 = vunpack.c.l.s8.bf16 %v124_v15  ;;  %v1322_v18 = vunpack.c.l.s8.bf16 %v126_v16 }
  0x5e   :  { %1159 = vmatpush1.bf16.msra.mxu0 %v1158_v21  ;;  %1287 = vmatpush1.bf16.msra.mxu1 %v1286_v22  ;;  %v129_v21 = vld [vmem:[#allocation6 + $0x188] sm:$0xff]  ;;  %v131_v22 = vld [vmem:[#allocation6 + $0x198] sm:$0xff] }
  0x5f   :  { %1161 = vmatprep.subr.bf16.mxu0 %v1160_v23  ;;  %1289 = vmatprep.subr.bf16.mxu1 %v1288_v24  ;;  %v1198_v23 = vunpack.c.h.s8.bf16 %v124_v15  ;;  %v1326_v24 = vunpack.c.h.s8.bf16 %v126_v16  ;;  %v1200_v25 = vunpack.c.l.s8.bf16 %v129_v21  ;;  %v1328_v26 = vunpack.c.l.s8.bf16 %v131_v22 }
  0x60   :  { %v1204_v31 = vunpack.c.h.s8.bf16 %v129_v21  ;;  %v1332_v32 = vunpack.c.h.s8.bf16 %v131_v22 }
  0x62   :  { %1163 = vmatpush1.bf16.msra.mxu0 %v1162_v27  ;;  %1291 = vmatpush1.bf16.msra.mxu1 %v1290_v28  ;;  %v128_v27 = vld [vmem:[#allocation6 + $0x180] sm:$0xff]  ;;  %v130_v28 = vld [vmem:[#allocation6 + $0x190] sm:$0xff] }
  0x63   :  { %1165 = vmatprep.subr.bf16.mxu0 %v1164_v29  ;;  %1293 = vmatprep.subr.bf16.mxu1 %v1292_v30  ;;  %v1202_v29 = vunpack.c.l.s8.bf16 %v128_v27  ;;  %v1330_v30 = vunpack.c.l.s8.bf16 %v130_v28 }
  0x66   :  { %1167 = vmatpush1.bf16.msra.mxu0 %v1166_v33  ;;  %1295 = vmatpush1.bf16.msra.mxu1 %v1294_v34  ;;  %v133_v33 = vld [vmem:[#allocation6 + $0x1a8] sm:$0xff]  ;;  %v135_v34 = vld [vmem:[#allocation6 + $0x1b8] sm:$0xff] }
  0x67   :  { %1169 = vmatprep.subr.bf16.mxu0 %v1168_v35  ;;  %1297 = vmatprep.subr.bf16.mxu1 %v1296_v36  ;;  %v1206_v35 = vunpack.c.h.s8.bf16 %v128_v27  ;;  %v1334_v36 = vunpack.c.h.s8.bf16 %v130_v28  ;;  %v1208_v37 = vunpack.c.l.s8.bf16 %v133_v33  ;;  %v1336_v38 = vunpack.c.l.s8.bf16 %v135_v34 }
  0x68   :  { %v1340_v44 = vunpack.c.h.s8.bf16 %v135_v34 }
  0x69   :  { %721 = vmatmul.mubr.f32.vlgmr.msra.gmra.mrb[0].mxu0 %v68_v39  ;;  %887 = vmatmul.mubr.f32.vlgmr.msra.gmra.mrb[0].mxu1 %v68_v39  ;;  %v132_v39 = vld [vmem:[#allocation6 + $0x1a0] sm:$0xff] }
  0x6a   :  { %1171 = vmatpush1.bf16.msra.mxu0 %v1170_v40  ;;  %1299 = vmatpush1.bf16.msra.mxu1 %v1298_v41  ;;  %v134_v40 = vld [vmem:[#allocation6 + $0x1b0] sm:$0xff]  ;;  %v1210_v41 = vunpack.c.l.s8.bf16 %v132_v39 }
  0x6b   :  { %1173 = vmatprep.subr.bf16.mxu0 %v1172_v42  ;;  %1301 = vmatprep.subr.bf16.mxu1 %v1300_v43  ;;  %v1338_v42 = vunpack.c.l.s8.bf16 %v134_v40  ;;  %v1212_v43 = vunpack.c.h.s8.bf16 %v133_v33 }
  0x6c   :  { %726 = vmatprep.mubr.f32.mxu0 %v73_v46  ;;  %892 = vmatprep.mubr.f32.mxu1 %v73_v46  ;;  %v139_v46 = vld [vmem:[#allocation6 + $0x1d8] sm:$0xff] }
  0x6d   :  { %727 = vmatmul.mubr.f32.gmra.mrb[2].mxu0 %v72_v49  ;;  %893 = vmatmul.mubr.f32.gmra.mrb[2].mxu1 %v72_v49  ;;  %v1216_v49 = vunpack.c.l.s8.bf16 %v137_v45 }
  0x6e   :  { %1175 = vmatpush1.bf16.msra.mxu0 %v1174_v47  ;;  %1303 = vmatpush1.bf16.msra.mxu1 %v1302_v48  ;;  %v1214_v47 = vunpack.c.h.s8.bf16 %v132_v39  ;;  %v1342_v48 = vunpack.c.h.s8.bf16 %v134_v40 }
  0x6f   :  { %1177 = vmatprep.subr.bf16.mxu0 %v1176_v50  ;;  %1305 = vmatprep.subr.bf16.mxu1 %v1304_v51  ;;  %v1344_v50 = vunpack.c.l.s8.bf16 %v139_v46  ;;  %v136_v51 = vld [vmem:[#allocation6 + $0x1c0] sm:$0xff] }
  0x70   :  { %732 = vmatprep.mubr.f32.mxu0 %v77_v54  ;;  %898 = vmatprep.mubr.f32.mxu1 %v77_v54  ;;  %v1218_v53 = vunpack.c.l.s8.bf16 %v136_v51  ;;  %v1346_v54 = vunpack.c.l.s8.bf16 %v138_v52 }
  0x71   :  { %733 = vmatmul.mubr.f32.gmra.mrb[4].mxu0 %v76_v57  ;;  %899 = vmatmul.mubr.f32.gmra.mrb[4].mxu1 %v76_v57  ;;  %v141_v57 = vld [vmem:[#allocation6 + $0x1e8] sm:$0xff] }
  0x72   :  { %1179 = vmatpush1.bf16.msra.mxu0 %v1178_v55  ;;  %1307 = vmatpush1.bf16.msra.mxu1 %v1306_v56  ;;  %v1220_v55 = vunpack.c.h.s8.bf16 %v137_v45  ;;  %v1348_v56 = vunpack.c.h.s8.bf16 %v139_v46  ;;  %v1224_v61 = vunpack.c.l.s8.bf16 %v141_v57  ;;  %v1228_v3 = vunpack.c.h.s8.bf16 %v141_v57 }
  0x73   :  { %1181 = vmatprep.subr.bf16.mxu0 %v1180_v58  ;;  %1309 = vmatprep.subr.bf16.mxu1 %v1308_v59  ;;  %v143_v58 = vld [vmem:[#allocation6 + $0x1f8] sm:$0xff]  ;;  %v1222_v59 = vunpack.c.h.s8.bf16 %v136_v51 }
  0x74   :  { %803 = vmatprep.mubr.f32.mxu0 %v71_v62  ;;  %969 = vmatprep.mubr.f32.mxu1 %v71_v62  ;;  %v1352_v62 = vunpack.c.l.s8.bf16 %v143_v58  ;;  %v1356_v4 = vunpack.c.h.s8.bf16 %v143_v58 }
  0x76   :  { %1183 = vmatpush1.bf16.msra.mxu0 %v1182_v63  ;;  %1311 = vmatpush1.bf16.msra.mxu1 %v1310_v0  ;;  %v140_v63 = vld [vmem:[#allocation6 + $0x1e0] sm:$0xff]  ;;  %v142_v0 = vld [vmem:[#allocation6 + $0x1f0] sm:$0xff] }
  0x77   :  { %1185 = vmatprep.subr.bf16.mxu0 %v1184_v1  ;;  %1313 = vmatprep.subr.bf16.mxu1 %v1312_v2  ;;  %v1226_v1 = vunpack.c.l.s8.bf16 %v140_v63  ;;  %v1354_v2 = vunpack.c.l.s8.bf16 %v142_v0 }
  0x7a   :  { %1187 = vmatpush1.bf16.msra.mxu0 %v1186_v5  ;;  %1315 = vmatpush1.bf16.msra.mxu1 %v1314_v6  ;;  %v1230_v5 = vunpack.c.h.s8.bf16 %v140_v63  ;;  %v1358_v6 = vunpack.c.h.s8.bf16 %v142_v0 }
  0x7b   :  { %1189 = vmatprep.subr.bf16.mxu0 %v1188_v7  ;;  %1317 = vmatprep.subr.bf16.mxu1 %v1316_v8  ;;  %v70_v7 = vld [vmem:[#allocation3 + $0x10] sm:$0xff]  ;;  %v75_v8 = vld [vmem:[#allocation3 + $0x38] sm:$0xff] }
  0x7e   :  { %1191 = vmatpush1.bf16.msra.mxu0 %v1190_v11  ;;  %1319 = vmatpush1.bf16.msra.mxu1 %v1318_v12  ;;  %v78_v11 = vld [vmem:[#allocation3 + $0x50] sm:$0xff] }
  0x7f   :  { %1193 = vmatprep.subr.bf16.mxu0 %v1192_v13  ;;  %1321 = vmatprep.subr.bf16.mxu1 %v1320_v14 }
  0x82   :  { %1195 = vmatpush1.bf16.msra.mxu0 %v1194_v17  ;;  %1323 = vmatpush1.bf16.msra.mxu1 %v1322_v18 }
  0x83   :  { %1197 = vmatprep.subr.bf16.mxu0 %v1196_v19  ;;  %1325 = vmatprep.subr.bf16.mxu1 %v1324_v20 }
  0x86   :  { %1199 = vmatpush1.bf16.msra.mxu0 %v1198_v23  ;;  %1327 = vmatpush1.bf16.msra.mxu1 %v1326_v24 }
  0x87   :  { %1201 = vmatprep.subr.bf16.mxu0 %v1200_v25  ;;  %1329 = vmatprep.subr.bf16.mxu1 %v1328_v26 }
  0x8a   :  { %1203 = vmatpush1.bf16.msra.mxu0 %v1202_v29  ;;  %1331 = vmatpush1.bf16.msra.mxu1 %v1330_v30 }
  0x8b   :  { %1205 = vmatprep.subr.bf16.mxu0 %v1204_v31  ;;  %1333 = vmatprep.subr.bf16.mxu1 %v1332_v32 }
  0x8e   :  { %1207 = vmatpush1.bf16.msra.mxu0 %v1206_v35  ;;  %1335 = vmatpush1.bf16.msra.mxu1 %v1334_v36 }
  0x8f   :  { %1209 = vmatprep.subr.bf16.mxu0 %v1208_v37  ;;  %1337 = vmatprep.subr.bf16.mxu1 %v1336_v38 }
  0x92   :  { %1211 = vmatpush1.bf16.msra.mxu0 %v1210_v41  ;;  %1339 = vmatpush1.bf16.msra.mxu1 %v1338_v42 }
  0x93   :  { %1213 = vmatprep.subr.bf16.mxu0 %v1212_v43  ;;  %1341 = vmatprep.subr.bf16.mxu1 %v1340_v44 }
  0x96   :  { %1215 = vmatpush1.bf16.msra.mxu0 %v1214_v47  ;;  %1343 = vmatpush1.bf16.msra.mxu1 %v1342_v48 }
  0x97   :  { %1217 = vmatprep.subr.bf16.mxu0 %v1216_v49  ;;  %1345 = vmatprep.subr.bf16.mxu1 %v1344_v50 }
  0x9a   :  { %1219 = vmatpush1.bf16.msra.mxu0 %v1218_v53  ;;  %1347 = vmatpush1.bf16.msra.mxu1 %v1346_v54 }
  0x9b   :  { %1221 = vmatprep.subr.bf16.mxu0 %v1220_v55  ;;  %1349 = vmatprep.subr.bf16.mxu1 %v1348_v56 }
  0x9e   :  { %1223 = vmatpush1.bf16.msra.mxu0 %v1222_v59  ;;  %1351 = vmatpush1.bf16.msra.mxu1 %v1350_v60 }
  0x9f   :  { %1225 = vmatprep.subr.bf16.mxu0 %v1224_v61  ;;  %1353 = vmatprep.subr.bf16.mxu1 %v1352_v62 }
  0xa2   :  { %1227 = vmatpush1.bf16.msra.mxu0 %v1226_v1  ;;  %1355 = vmatpush1.bf16.msra.mxu1 %v1354_v2 }
  0xa3   :  { %1229 = vmatprep.subr.bf16.mxu0 %v1228_v3  ;;  %1357 = vmatprep.subr.bf16.mxu1 %v1356_v4 }
  0xa6   :  { %1231 = vmatpush1.bf16.msra.mxu0 %v1230_v5  ;;  %1359 = vmatpush1.bf16.msra.mxu1 %v1358_v6 }
  0xa9   :  { %804 = vmatmul.mubr.f32.vlgmr.msra.gmra.mrb[0].mxu0 %v70_v7  ;;  %970 = vmatmul.mubr.f32.vlgmr.msra.gmra.mrb[0].mxu1 %v70_v7 }
  0xaa   :  { %809 = vmatprep.mubr.f32.mxu0 %v75_v8  ;;  %975 = vmatprep.mubr.f32.mxu1 %v75_v8 }
  0xad   :  { %810 = vmatmul.mubr.f32.gmra.mrb[2].mxu0 %v74_v9  ;;  %976 = vmatmul.mubr.f32.gmra.mrb[2].mxu1 %v74_v9 }
  0xae   :  { %815 = vmatprep.mubr.f32.mxu0 %v79_v10  ;;  %981 = vmatprep.mubr.f32.mxu1 %v79_v10 }
  0xb1   :  { %816 = vmatmul.mubr.f32.gmra.mrb[4].mxu0 %v78_v11  ;;  %982 = vmatmul.mubr.f32.gmra.mrb[4].mxu1 %v78_v11 }
 0x17c   :  { %v805_v12 = vpop.f32.mrb[0].mxu0  ;;  %v971_v13 = vpop.f32.mrb[0].mxu1 }
 0x17d   :  { %v807_v14 = vpop.f32.mrb[1].mxu0  ;;  %v973_v15 = vpop.f32.mrb[1].mxu1  ;;  %v1027_v18 = vmul.f32 %v805_v12, %v805_v12  ;;  %v1029_v19 = vmul.f32 %v971_v13, %v971_v13 }
 0x17e   :  { %v1028_v24 = vmul.f32 %v807_v14, %v807_v14  ;;  %v1030_v25 = vmul.f32 %v973_v15, %v973_v15 }
 0x180   :  { %v811_v16 = vpop.f32.mrb[2].mxu0  ;;  %v977_v17 = vpop.f32.mrb[2].mxu1 }
 0x181   :  { %v1031_v20 = vmul.f32 %v811_v16, %v811_v16  ;;  %v1033_v21 = vmul.f32 %v977_v17, %v977_v17  ;;  %v813_v22 = vpop.f32.mrb[3].mxu0  ;;  %v979_v23 = vpop.f32.mrb[3].mxu1 }
 0x182   :  { %v1032_v26 = vmul.f32 %v813_v22, %v813_v22  ;;  %v1034_v27 = vmul.f32 %v979_v23, %v979_v23 }
 0x183   :  { %v1039_v28 = vadd.f32 %v1031_v20, %v1027_v18  ;;  %v1041_v29 = vadd.f32 %v1033_v21, %v1029_v19 }
 0x184   :  { %v1040_v30 = vadd.f32 %v1032_v26, %v1028_v24  ;;  %v1042_v31 = vadd.f32 %v1034_v27, %v1030_v25  ;;  %v817_v32 = vpop.f32.mrb[4].mxu0  ;;  %v983_v33 = vpop.f32.mrb[4].mxu1 }
 0x185   :  { %v1035_v34 = vmul.f32 %v817_v32, %v817_v32  ;;  %v1037_v35 = vmul.f32 %v983_v33, %v983_v33  ;;  %v819_v36 = vpop.f32.mrb[5].mxu0  ;;  %v985_v37 = vpop.f32.mrb[5].mxu1 }
 0x186   :  { %v1036_v38 = vmul.f32 %v819_v36, %v819_v36  ;;  %v1038_v39 = vmul.f32 %v985_v37, %v985_v37 }
 0x187   :  { %v1043_v40 = vadd.f32 %v1039_v28, %v1035_v34  ;;  %v1045_v41 = vadd.f32 %v1041_v29, %v1037_v35 }
 0x188   :  { %v1044_v42 = vadd.f32 %v1040_v30, %v1036_v38  ;;  %v1046_v43 = vadd.f32 %v1042_v31, %v1038_v39 }
 0x189   :  { %1379 = vrsqrt.f32 %v1043_v40  ;;  %vm1049_vm0 = vcmp.eq.f32.partialorder %v1043_v40, inf  ;;  %v1052_v48 = vand.u32 2147483648, %v1043_v40  ;;  %vm1051_vm1 = vcmp.eq.f32.partialorder %v1043_v40, 0.0 }
 0x18a   :  { %1381 = vrsqrt.f32 %v1045_v41  ;;  %vm1056_vm2 = vcmp.eq.f32.partialorder %v1044_v42, inf  ;;  %v1059_v54 = vand.u32 2147483648, %v1044_v42  ;;  %vm1063_vm3 = vcmp.eq.f32.partialorder %v1045_v41, inf }
 0x18b   :  { %1383 = vrsqrt.f32 %v1044_v42  ;;  %vm1058_vm4 = vcmp.eq.f32.partialorder %v1044_v42, 0.0  ;;  %v1066_v59 = vand.u32 2147483648, %v1045_v41  ;;  %vm1070_vm5 = vcmp.eq.f32.partialorder %v1046_v43, inf }
 0x18c   :  { %1385 = vrsqrt.f32 %v1046_v43  ;;  %vm1065_vm6 = vcmp.eq.f32.partialorder %v1045_v41, 0.0  ;;  %v1073_v63 = vand.u32 2147483648, %v1046_v43  ;;  %vm1072_vm7 = vcmp.eq.f32.partialorder %v1046_v43, 0.0 }
 0x193   :  { %v1380_v44 = vpop.eup %1379 }
 0x194   :  { %v1382_v45 = vpop.eup %1381  ;;  %v1048_v46 = vmul.f32 %v1380_v44, %v1043_v40 }
 0x195   :  { %v1384_v47 = vpop.eup %1383  ;;  %v1062_v49 = vmul.f32 %v1382_v45, %v1045_v41 }
 0x196   :  { %v1386_v50 = vpop.eup %1385  ;;  %v1050_v51 = vsel %vm1049_vm0, %v1043_v40, %v1048_v46  ;;  %v1055_v52 = vmul.f32 %v1384_v47, %v1044_v42 }
 0x197   :  { %v1053_v53 = vsel %vm1051_vm1, %v1052_v48, %v1050_v51  ;;  %v1069_v55 = vmul.f32 %v1386_v50, %v1046_v43  ;;  %v1064_v57 = vsel %vm1063_vm3, %v1045_v41, %v1062_v49 }
 0x198   :  { %v1057_v56 = vsel %vm1056_vm2, %v1044_v42, %v1055_v52  ;;  %v1067_v62 = vsel %vm1065_vm6, %v1066_v59, %v1064_v57 }
 0x199   :  { %v1060_v58 = vsel %vm1058_vm4, %v1059_v54, %v1057_v56  ;;  %v1071_v60 = vsel %vm1070_vm5, %v1046_v43, %v1069_v55 }
 0x19a   :  { %v1075_v61 = vadd.f32 %v1060_v58, %v1053_v53  ;;  %v1074_v1 = vsel %vm1072_vm7, %v1073_v63, %v1071_v60 }
 0x19c   :  { %v1076_v0 = vadd.f32 %v1075_v61, %v1067_v62 }
 0x19e   :  { %v1077_v2 = vadd.f32 %v1076_v0, %v1074_v1 }
 0x1a0   :  { %1078 = vadd.xlane.f32.xlu0 %v1077_v2 }
 0x22d   :  { %v1079_v3 = vpop.xlane.xlu0 %1078 }
 0x22e   :  { %v1080_v4 = vrot.slane %v1079_v3, 4 }
 0x230   :  { %v1081_v5 = vadd.f32 %v1080_v4, %v1079_v3 }
 0x232   :  { %v1082_v6 = vrot.slane %v1081_v5, 2 }
 0x234   :  { %v1083_v7 = vadd.f32 %v1082_v6, %v1081_v5 }
 0x236   :  { %v1084_v8 = vrot.slane %v1083_v7, 1 }
 0x238   :  { %v1085_v9 = vadd.f32 %v1084_v8, %v1083_v7 }
 0x23a   :  { %1372 = vpush %v1085_v9 }
 0x26b   :  { %s1373_s1 = spop %1372 }
 0x26c   :  { %1088 = sst [smem:[#allocation8]] %s1373_s1 }
 0x26d   :  { %1440 = shalt.err (!%p1437_p4)
}
 0x26e   :  { %s1451_s13 = smov [#allocation8]  }
 0x26f   :  { %1096 = dma.smem_to_hbm %s1451_s13, 16, %s1505_s2, [#allocation5]  }
 0x270   :  { %1445 = dma.done.wait [#allocation5], 16  }
 0x271   :  { %1446 = vsyncadd [#allocation5], 4294967280 }
 0x272   :  { %1100 = sfence }
 0x273   :  { %1101 = vsyncpa [#allocation4], 1 }
 0x274   :  { %1102 = vsyncpa [#allocation7], 1 }
 0x275   :  { %1103 = vsyncpa [#allocation5], 1 }

</bundles_post_ra>
